<compile_context>
chip_gen: v5e
topology: v5e:2x2
jax: 0.10.0
libtpu: 0.0.40
codegen_flags: <defaults>
</compile_context>

<pallas_src>
import functools

import jax
import jax.numpy as jnp
from jax import lax
from jax.experimental import pallas as pl
from jax.experimental.pallas import tpu as pltpu


# ----------------------------------------------------------------------------
# Helpers
# ----------------------------------------------------------------------------
def _round_up(x, m):
    return ((x + m - 1) // m) * m


def _tpu_generation():
    """Best-effort TPU generation detection (5 = v5e, 6 = v6e, 7 = v7x)."""
    try:
        kind = jax.devices()[0].device_kind.lower()
    except Exception:
        return 6
    for g in (7, 6, 5, 4):
        if f"v{g}" in kind or f"tpu{g}" in kind:
            return g
    return 6


def _vmem_capacity_bytes():
    try:
        return int(pltpu.get_tpu_info().vmem_capacity_bytes)
    except Exception:
        return 64 * 2 ** 20  # conservative fallback: v7x per-TensorCore VMEM


def _pick_tile(n, max_tile):
    """Largest multiple of 128 that divides n (capped), else the full extent."""
    best = None
    for t in range(128, min(n, max_tile) + 1, 128):
        if n % t == 0:
            best = t
    return best if best is not None else n


# ----------------------------------------------------------------------------
# Pass 1: fused Q/K/V 1x1 projections (computed exactly once per pixel)
# ----------------------------------------------------------------------------
def _qkv_projection_kernel(x_ref, w_ref, b_ref, q_ref, k_ref, v_ref, *, c8p):
    """One (batch, pixel-tile) step.

      x_ref : (1, C, TP)   f32, pixels on the lane axis
      w_ref : (2*C8p + Cvp, C) bf16  fused [Wq_pad ; Wk_pad ; Wv_aug]
      b_ref : (2*C8p + Cvp, 1) f32
      q_ref/k_ref : (1, C8p, TP) bf16
      v_ref : (1, Cvp, TP) bf16   (row C is the all-ones denominator row)
    """
    x_b = x_ref[0].astype(jnp.bfloat16)                                # (C, TP)
    qkv = (jnp.dot(w_ref[...], x_b, preferred_element_type=jnp.float32)
           + b_ref[...])                                               # f32
    q_ref[0] = qkv[:c8p].astype(jnp.bfloat16)
    k_ref[0] = qkv[c8p:2 * c8p].astype(jnp.bfloat16)
    v_ref[0] = qkv[2 * c8p:].astype(jnp.bfloat16)


# ----------------------------------------------------------------------------
# Pass 2: flash-style spatial self-attention + gamma residual
# ----------------------------------------------------------------------------
def _attention_kernel(q_ref, k_ref, v_ref, xres_ref, gamma_ref, o_ref,
                      m_ref, acc_ref, *, c, exp_bf16):
    """One (batch, query-tile, key-tile) grid step.

      q_ref   : (1, C8p, TQ) bf16  (resident across the key axis)
      k_ref   : (1, C8p, TK) bf16
      v_ref   : (1, Cvp, TK) bf16  (row c == 1.0 -> denominator folded into AV)
      xres_ref: (1, C,  TQ)  f32   residual (read only at finalize)
      o_ref   : (1, C,  TQ)  f32   lane-dense output tile
      m_ref   : (1, TQ)      f32   running max
      acc_ref : (Cvp, TQ)    f32   output accumulator (+ denominator row)
    """
    ki = pl.program_id(2)

    @pl.when(ki == 0)
    def _init():
        m_ref[...] = jnp.full(m_ref.shape, -jnp.inf, dtype=m_ref.dtype)
        acc_ref[...] = jnp.zeros(acc_ref.shape, dtype=acc_ref.dtype)

    q = q_ref[0]                                                 # (C8p, TQ)
    k = k_ref[0]                                                 # (C8p, TK)
    v = v_ref[0]                                                 # (Cvp, TK)

    # Scores, transposed: s_t[j, i] = <k_j, q_i> = energy[i, j].
    s_t = lax.dot_general(k, q, (((0,), (0,)), ((), ())),
                          preferred_element_type=jnp.float32)    # (TK, TQ)

    # Online softmax over the key axis (sublane axis of s_t).
    m_prev = m_ref[...]                                          # (1, TQ)
    m_new = jnp.maximum(m_prev, jnp.max(s_t, axis=0, keepdims=True))
    alpha = jnp.exp(m_prev - m_new)                              # (1, TQ)
    diff = s_t - m_new
    if exp_bf16:                                                 # v6e / v7x
        p_t = jnp.exp(diff.astype(jnp.bfloat16))                 # (TK, TQ) bf16
    else:                                                        # v5e and older
        p_t = jnp.exp(diff).astype(jnp.bfloat16)

    # AV matmul; the all-ones row of v accumulates the softmax denominator.
    acc_ref[...] = alpha * acc_ref[...] + jnp.dot(
        v, p_t, preferred_element_type=jnp.float32)              # (Cvp, TQ)
    m_ref[...] = m_new

    @pl.when(ki == pl.num_programs(2) - 1)
    def _finalize():
        acc = acc_ref[...]
        inv_l = pl.reciprocal(acc[c:c + 1, :], approx=False)     # denom row
        gamma = gamma_ref[0]                                     # SMEM scalar
        out = gamma * (acc[:c] * inv_l) + xres_ref[0]            # (C, TQ)
        o_ref[0] = out.astype(o_ref.dtype)                       # lane-dense vst


# ----------------------------------------------------------------------------
# Wrapper
# ----------------------------------------------------------------------------
def self_attention_pallas(x_nchw, wq, bq, wk, bk, wv, bv, gamma,
                          *, tq=None, tk=None, tp=None):
    """x_nchw: (B, C, H, W); wq/wk: (C8, C); wv: (C, C); biases 1-D; gamma scalar."""
    B, C, H, W = x_nchw.shape
    N = H * W
    C8 = wq.shape[0]
    C8p = _round_up(C8, 16)        # bf16 packs sublanes in 16s
    Cvp = _round_up(C + 1, 16)     # value rows + all-ones denominator row

    gen = _tpu_generation()
    max_attn_tile = {5: 256, 6: 512, 7: 256}.get(gen, 256)
    auto_tq = tq is None
    if tq is None:
        tq = _pick_tile(N, max_attn_tile)
    if tk is None:
        tk = _pick_tile(N, max_attn_tile)
    if tp is None:
        tp = _pick_tile(N, 512)
    # v7x: keep both TensorCores busy — need >= 2 parallel grid steps.
    if gen >= 7 and auto_tq and B * (N // tq) < 2:
        tq = _pick_tile(N, max(128, tq // 2))
    assert N % tq == 0 and N % tk == 0 and N % tp == 0, (N, tq, tk, tp)

    exp_bf16 = gen >= 6            # bf16 EUP only on v6e / v7x

    # Free reshape: NCHW -> (B, C, N); pixels land on the lane axis.
    x_cn = x_nchw.reshape(B, C, N).astype(jnp.float32)

    # ---- fused projection weights ------------------------------------------
    def pad_rows(w, b, rows):
        w = jnp.asarray(w, jnp.float32)
        b = jnp.asarray(b, jnp.float32)
        return (jnp.pad(w, ((0, rows - w.shape[0]), (0, 0))),
                jnp.pad(b, ((0, rows - b.shape[0]),)))

    wq_p, bq_p = pad_rows(wq, bq, C8p)   # zero rows -> zero score contribution
    wk_p, bk_p = pad_rows(wk, bk, C8p)
    wv_p, bv_p = pad_rows(wv, bv, Cvp)   # zero rows -> ignored output rows
    bv_p = bv_p.at[C].set(1.0)           # zero-weight / bias=1 -> exact ones row

    w_all = jnp.concatenate([wq_p, wk_p, wv_p], axis=0).astype(jnp.bfloat16)
    b_all = jnp.concatenate([bq_p, bk_p, bv_p], axis=0).reshape(-1, 1)
    rows_all = 2 * C8p + Cvp

    gamma_s = jnp.asarray(gamma, jnp.float32).reshape(1,)

    vmem_cap = _vmem_capacity_bytes()

    # ---- pass 1: Q/K/V projections (once per pixel, never recomputed) -------
    proj_est = (2 * C * tp * 4                        # x tile, double-buffered
                + 2 * 2 * rows_all * tp * 2           # q/k/v out tiles, dbl-buffered
                + rows_all * tp * 4                   # f32 qkv intermediate
                + rows_all * (C * 2 + 4)              # resident weights + bias
                + (1 << 20))
    proj_limit = int(min(0.6 * vmem_cap, max(2 * proj_est, 16 * 2 ** 20)))

    q_all, k_all, v_all = pl.pallas_call(
        functools.partial(_qkv_projection_kernel, c8p=C8p),
        out_shape=(jax.ShapeDtypeStruct((B, C8p, N), jnp.bfloat16),
                   jax.ShapeDtypeStruct((B, C8p, N), jnp.bfloat16),
                   jax.ShapeDtypeStruct((B, Cvp, N), jnp.bfloat16)),
        grid_spec=pltpu.PrefetchScalarGridSpec(
            num_scalar_prefetch=0,
            grid=(B, N // tp),
            in_specs=[
                pl.BlockSpec((1, C, tp), lambda b, p: (b, 0, p)),     # x tile
                pl.BlockSpec((rows_all, C), lambda b, p: (0, 0)),     # fused W
                pl.BlockSpec((rows_all, 1), lambda b, p: (0, 0)),     # fused b
            ],
            out_specs=(
                pl.BlockSpec((1, C8p, tp), lambda b, p: (b, 0, p)),   # q
                pl.BlockSpec((1, C8p, tp), lambda b, p: (b, 0, p)),   # k
                pl.BlockSpec((1, Cvp, tp), lambda b, p: (b, 0, p)),   # v (+ones)
            )),
        compiler_params=pltpu.CompilerParams(
            dimension_semantics=("parallel", "parallel"),
            vmem_limit_bytes=proj_limit),
    )(x_cn, w_all, b_all)

    # ---- pass 2: flash attention + gamma residual ---------------------------
    att_est = (2 * C8p * tq * 2          # q tile (resident, double-buffered)
               + 2 * C8p * tk * 2        # k tile
               + 2 * Cvp * tk * 2        # v tile
               + 2 * C * tq * 4          # residual x tile
               + 2 * C * tq * 4          # output tile
               + Cvp * tq * 4 + tq * 4   # acc + m scratch
               + tq * tk * 10            # s_t (f32) + p_t (bf16) temporaries
               + (1 << 20))
    att_limit = int(min(0.6 * vmem_cap, max(2 * att_est, 16 * 2 ** 20)))

    out_cn = pl.pallas_call(
        functools.partial(_attention_kernel, c=C, exp_bf16=exp_bf16),
        out_shape=jax.ShapeDtypeStruct((B, C, N), jnp.float32),
        grid_spec=pltpu.PrefetchScalarGridSpec(
            num_scalar_prefetch=0,
            grid=(B, N // tq, N // tk),
            in_specs=[
                pl.BlockSpec((1, C8p, tq), lambda b, qi, ki: (b, 0, qi)),  # q
                pl.BlockSpec((1, C8p, tk), lambda b, qi, ki: (b, 0, ki)),  # k
                pl.BlockSpec((1, Cvp, tk), lambda b, qi, ki: (b, 0, ki)),  # v
                pl.BlockSpec((1, C, tq), lambda b, qi, ki: (b, 0, qi)),    # residual
                pl.BlockSpec(memory_space=pltpu.MemorySpace.SMEM),         # gamma
            ],
            out_specs=pl.BlockSpec((1, C, tq), lambda b, qi, ki: (b, 0, qi)),
            scratch_shapes=[
                pltpu.VMEM((1, tq), jnp.float32),     # running max m
                pltpu.VMEM((Cvp, tq), jnp.float32),   # accumulator (+ denom row)
            ]),
        compiler_params=pltpu.CompilerParams(
            dimension_semantics=("parallel", "parallel", "arbitrary"),
            vmem_limit_bytes=att_limit),
    )(q_all, k_all, v_all, x_cn, gamma_s)

    return out_cn.reshape(B, C, H, W)


# ----------------------------------------------------------------------------
# Pure-JAX reference (mirrors the PyTorch forward exactly, f32)
# ----------------------------------------------------------------------------
def self_attention_ref(x, wq, bq, wk, bk, wv, bv, gamma):
    B, C, H, W = x.shape
    N = H * W

    def conv1x1(x, w, b):   # w: (Cout, Cin)
        return jnp.einsum('bchw,oc->bohw', x, w) + b[None, :, None, None]

    q = conv1x1(x, wq, bq).reshape(B, -1, N)           # (B, C8, N)
    k = conv1x1(x, wk, bk).reshape(B, -1, N)           # (B, C8, N)
    v = conv1x1(x, wv, bv).reshape(B, -1, N)           # (B, C, N)
    energy = jnp.einsum('bci,bcj->bij', q, k)          # (B, N, N)
    attn = jax.nn.softmax(energy, axis=-1)
    out = jnp.einsum('bcj,bij->bci', v, attn)          # (B, C, N)
    out = out.reshape(B, C, H, W)
    return gamma * out + x


if __name__ == "__main__":
    B, C, H, W = 2, 16, 16, 16          # N = 256 -> 2 query tiles x 2 key tiles
    C8 = max(1, C // 8)

    key = jax.random.PRNGKey(0)
    kx, kwq, kbq, kwk, kbk, kwv, kbv = jax.random.split(key, 7)

    x = jax.random.normal(kx, (B, C, H, W), dtype=jnp.float32)

    # Deterministic synthetic parameters (shapes from nn.Conv2d(in, out, 1)).
    wq = jax.random.normal(kwq, (C8, C), dtype=jnp.float32) * 0.1
    bq = jax.random.normal(kbq, (C8,), dtype=jnp.float32) * 0.1
    wk = jax.random.normal(kwk, (C8, C), dtype=jnp.float32) * 0.1
    bk = jax.random.normal(kbk, (C8,), dtype=jnp.float32) * 0.1
    wv = jax.random.normal(kwv, (C, C), dtype=jnp.float32) * 0.1
    bv = jax.random.normal(kbv, (C,), dtype=jnp.float32) * 0.1
    # gamma is zero-initialized in the module; use a nonzero value so the
    # attention path is actually exercised / checked.
    gamma = jnp.float32(0.5)

    # tq = tk = 128 exercises the multi-step online-softmax accumulation path.
    out = jax.block_until_ready(
        self_attention_pallas(x, wq, bq, wk, bk, wv, bv, gamma, tq=128, tk=128))
    ref = jax.block_until_ready(
        self_attention_ref(x, wq, bq, wk, bk, wv, bv, gamma))

    assert out.shape == (B, C, H, W)
    err = jnp.max(jnp.abs(out - ref))
    # bf16 MXU operands (+ bf16 exp on v6e/v7x): tolerance loosened vs f32 path.
    assert jnp.allclose(out, ref, atol=2e-2, rtol=2e-2), f"max abs err {err}"

    print("KERNEL_OK")
</pallas_src>

<mosaic_0001>
module attributes {stable_mosaic.version = 11 : i64} {
  func.func @_qkv_projection_kernel(%arg0: i32, %arg1: i32, %arg2: memref<1x16x256xf32, #tpu.memory_space<vmem>>, %arg3: memref<64x16xbf16, #tpu.memory_space<vmem>>, %arg4: memref<64x1xf32, #tpu.memory_space<vmem>>, %arg5: memref<1x16x256xbf16, #tpu.memory_space<vmem>>, %arg6: memref<1x16x256xbf16, #tpu.memory_space<vmem>>, %arg7: memref<1x32x256xbf16, #tpu.memory_space<vmem>>) attributes {dimension_semantics = [#tpu.dimension_semantics<parallel>, #tpu.dimension_semantics<parallel>], iteration_bounds = array<i64: 2, 1>, scalar_prefetch = 0 : i64, scratch_operands = 0 : i64, tpu.core_type = #tpu.core_type<tc>, window_params = [{transform_indices = @transform_0, window_bounds = array<i64: 1, 16, 256>}, {pipeline_mode = #tpu.pipeline_mode<synchronous>, transform_indices = @transform_1, window_bounds = array<i64: 64, 16>}, {pipeline_mode = #tpu.pipeline_mode<synchronous>, transform_indices = @transform_2, window_bounds = array<i64: 64, 1>}, {transform_indices = @transform_3, window_bounds = array<i64: 1, 16, 256>}, {transform_indices = @transform_4, window_bounds = array<i64: 1, 16, 256>}, {transform_indices = @transform_5, window_bounds = array<i64: 1, 32, 256>}]} {
    %c0 = arith.constant 0 : index
    %c0_0 = arith.constant 0 : index
    %c0_1 = arith.constant 0 : index
    %0 = vector.load %arg2[%c0, %c0_0, %c0_1] : memref<1x16x256xf32, #tpu.memory_space<vmem>>, vector<1x16x256xf32>
    %1 = vector.shape_cast %0 : vector<1x16x256xf32> to vector<16x256xf32>
    %2 = arith.truncf %1 : vector<16x256xf32> to vector<16x256xbf16>
    %c0_2 = arith.constant 0 : index
    %c0_3 = arith.constant 0 : index
    %3 = vector.load %arg3[%c0_2, %c0_3] : memref<64x16xbf16, #tpu.memory_space<vmem>>, vector<64x16xbf16>
    %cst = arith.constant dense<0.000000e+00> : vector<64x256xf32>
    %4 = tpu.matmul %3, %2, %cst {dimension_numbers = #tpu.dot_dimension_numbers<[1], [0], [0], [1], [0, 0, 1, 1], [], []>} : vector<64x16xbf16>, vector<16x256xbf16>, vector<64x256xf32> -> vector<64x256xf32>
    %c0_4 = arith.constant 0 : index
    %c0_5 = arith.constant 0 : index
    %5 = vector.load %arg4[%c0_4, %c0_5] : memref<64x1xf32, #tpu.memory_space<vmem>>, vector<64x1xf32>
    %6 = vector.broadcast %5 : vector<64x1xf32> to vector<64x256xf32>
    %7 = arith.addf %4, %6 : vector<64x256xf32>
    %8 = vector.extract_strided_slice %7 {offsets = [0, 0], sizes = [16, 256], strides = [1, 1]} : vector<64x256xf32> to vector<16x256xf32>
    %9 = arith.truncf %8 : vector<16x256xf32> to vector<16x256xbf16>
    %c0_6 = arith.constant 0 : index
    %c0_7 = arith.constant 0 : index
    %c0_8 = arith.constant 0 : index
    %10 = vector.load %arg5[%c0_6, %c0_7, %c0_8] : memref<1x16x256xbf16, #tpu.memory_space<vmem>>, vector<1x16x256xbf16>
    %11 = vector.shape_cast %10 : vector<1x16x256xbf16> to vector<16x256xbf16>
    %12 = vector.shape_cast %9 : vector<16x256xbf16> to vector<1x16x256xbf16>
    tpu.vector_store %arg5[%c0_6, %c0_7, %c0_8], %12 {strides = array<i32>} : memref<1x16x256xbf16, #tpu.memory_space<vmem>>, vector<1x16x256xbf16>,
    %13 = vector.extract_strided_slice %7 {offsets = [16, 0], sizes = [16, 256], strides = [1, 1]} : vector<64x256xf32> to vector<16x256xf32>
    %14 = arith.truncf %13 : vector<16x256xf32> to vector<16x256xbf16>
    %c0_9 = arith.constant 0 : index
    %c0_10 = arith.constant 0 : index
    %c0_11 = arith.constant 0 : index
    %15 = vector.load %arg6[%c0_9, %c0_10, %c0_11] : memref<1x16x256xbf16, #tpu.memory_space<vmem>>, vector<1x16x256xbf16>
    %16 = vector.shape_cast %15 : vector<1x16x256xbf16> to vector<16x256xbf16>
    %17 = vector.shape_cast %14 : vector<16x256xbf16> to vector<1x16x256xbf16>
    tpu.vector_store %arg6[%c0_9, %c0_10, %c0_11], %17 {strides = array<i32>} : memref<1x16x256xbf16, #tpu.memory_space<vmem>>, vector<1x16x256xbf16>,
    %18 = vector.extract_strided_slice %7 {offsets = [32, 0], sizes = [32, 256], strides = [1, 1]} : vector<64x256xf32> to vector<32x256xf32>
    %19 = arith.truncf %18 : vector<32x256xf32> to vector<32x256xbf16>
    %c0_12 = arith.constant 0 : index
    %c0_13 = arith.constant 0 : index
    %c0_14 = arith.constant 0 : index
    %20 = vector.load %arg7[%c0_12, %c0_13, %c0_14] : memref<1x32x256xbf16, #tpu.memory_space<vmem>>, vector<1x32x256xbf16>
    %21 = vector.shape_cast %20 : vector<1x32x256xbf16> to vector<32x256xbf16>
    %22 = vector.shape_cast %19 : vector<32x256xbf16> to vector<1x32x256xbf16>
    tpu.vector_store %arg7[%c0_12, %c0_13, %c0_14], %22 {strides = array<i32>} : memref<1x32x256xbf16, #tpu.memory_space<vmem>>, vector<1x32x256xbf16>,
    return
  }
  func.func @transform_0(%arg0: i32, %arg1: i32) -> (i32, i32, i32) {
    %c0_i32 = arith.constant 0 : i32
    %c0_i32_0 = arith.constant 0 : i32
    return %arg0, %c0_i32, %arg1 : i32, i32, i32
  }
  func.func @transform_1(%arg0: i32, %arg1: i32) -> (i32, i32) {
    %c0_i32 = arith.constant 0 : i32
    %c0_i32_0 = arith.constant 0 : i32
    %c0_i32_1 = arith.constant 0 : i32
    return %c0_i32, %c0_i32_0 : i32, i32
  }
  func.func @transform_2(%arg0: i32, %arg1: i32) -> (i32, i32) {
    %c0_i32 = arith.constant 0 : i32
    %c0_i32_0 = arith.constant 0 : i32
    %c0_i32_1 = arith.constant 0 : i32
    return %c0_i32, %c0_i32_0 : i32, i32
  }
  func.func @transform_3(%arg0: i32, %arg1: i32) -> (i32, i32, i32) {
    %c0_i32 = arith.constant 0 : i32
    %c0_i32_0 = arith.constant 0 : i32
    return %arg0, %c0_i32, %arg1 : i32, i32, i32
  }
  func.func @transform_4(%arg0: i32, %arg1: i32) -> (i32, i32, i32) {
    %c0_i32 = arith.constant 0 : i32
    %c0_i32_0 = arith.constant 0 : i32
    return %arg0, %c0_i32, %arg1 : i32, i32, i32
  }
  func.func @transform_5(%arg0: i32, %arg1: i32) -> (i32, i32, i32) {
    %c0_i32 = arith.constant 0 : i32
    %c0_i32_0 = arith.constant 0 : i32
    return %arg0, %c0_i32, %arg1 : i32, i32, i32
  }
}

</mosaic_0001>

<bundles_post_ra>
// kernel: tpu_custom_call.1
= control target key start
LH: loop header
LB: loop body
LE: loop exit
PB: predicated region body
PF: predicated region fallthrough
CT: control target
= control target key end

     0   :  { %11 = vsyncpa [#allocation3], 0  ;;  %s1182_s0 = inlined_call_operand.vmem [shape: f32[2,16,256], index: 0, kind: input, shape index: {}]   ;;  %s1183_s1 = inlined_call_operand.vmem [shape: bf16[64,16], index: 1, kind: input, shape index: {}]   ;;  %s1184_s2 = inlined_call_operand.vmem [shape: f32[64,1], index: 2, kind: input, shape index: {}]   ;;  %s1185_s3 = inlined_call_operand.hbm [shape: bf16[2,16,256], index: 3, kind: output, shape index: {0}]   ;;  %s1186_s4 = inlined_call_operand.hbm [shape: bf16[2,16,256], index: 4, kind: output, shape index: {1}]   ;;  %s1187_s5 = inlined_call_operand.hbm [shape: bf16[2,32,256], index: 5, kind: output, shape index: {2}]  }
   0x1   :  { %13 = vsyncpa [#allocation3 + $0x1], 0 }
   0x2   :  { %14 = vsyncpa [#allocation5], 0 }
   0x3   :  { %16 = vsyncpa [#allocation5 + $0x1], 0  ;;  %s961_s18 = smov 0   ;;  %s963_s19 = smov 0  }
   0x4   :  { %s965_s20 = smov 0   ;;  %s967_s21 = smov 0  }
   0x5   :  { %s969_s22 = smov 0   ;;  %s971_s23 = smov 0  }
   0x6 LB: > { %s1189_s24 = sadd.s32 4294967295, %s926_s23   ;;  %s1188_s25 = sadd.s32 4294967294, %s926_s23   ;;  %s926_s23 = sphi %s971_s23, %s22_s23   ;;  %s922_s22 = sphi %s969_s22, %s1206_s22   ;;  %s918_s21 = sphi %s967_s21, %s1205_s21   ;;  %s914_s20 = sphi %s965_s20, %s1204_s20   ;;  %s910_s19 = sphi %s963_s19, %s1203_s19   ;;  %s906_s18 = sphi %s961_s18, %s1202_s18  }
   0x7   : > { %s34_s26 = sadd.s32 1, %s922_s22  ;;  %s113_s27 = sadd.s32 1, %s914_s20 }
   0x8   : > { %p36_p0 = scmp.ge.s32.totalorder %s34_s26, 2  ;;  %p123_p1 = scmp.ne.s32.totalorder %s914_s20, %s910_s19 }
   0x9   : > { %p124_p2 = scmp.eq.s32.totalorder %s1189_s24, 1  ;;  %p129_p3 = scmp.ne.s32.totalorder %s910_s19, %s906_s18 }
   0xa   : > { %s1208_s26 = smov (%p36_p0, %s34_s26), 0  ;;  %p130_p5 = scmp.eq.s32.totalorder %s1188_s25, 1 }
   0xb   : > { %p1003_p4 = por %p124_p2, %p123_p1  ;;  %s108_s29 = ssub.s32 %s922_s22, %s1208_s26 }
   0xc   : > { %p666_p6 = scmp.ge.s32.totalorder %s926_s23, 1  ;;  %p111_p7 = scmp.eq.s32.totalorder %s108_s29, 0 }
   0xd   : > { %p1012_p8 = por %p130_p5, %p129_p3  ;;  %p223_p9 = scmp.lt.s32.totalorder %s926_s23, 3 }
   0xe   : > { %s1018_s6 = scalar_select %p111_p7, %s914_s20, %s113_s27  }
   0xf   : > { %p224_p10 = pnand %p666_p6, %p223_p9 }
  0x10   : > { %p266_p11 = scmp.lt.s32.totalorder (!%p224_p10), %s918_s21, 1  ;;  %s1070_s10 = sand.u32 (!%p224_p10), 1, %s910_s19  }
  0x11   : > { %227 = sbr.rel (%p224_p10) target bundleno = 208 (0xd0), region = 32  ;;  %s1190_s12 = sshll.u32 (!%p224_p10), %s918_s21, 4 }
  0x12   : > { %s449_s8 = scalar_lea.sflag (!%p224_p10), [#allocation3], %s1070_s10 }
  0x16   : > { %v295_v0 = vld [vmem:[%s1184_s2 + $0x10] sm:$0xff]  ;;  %v928_v1 = vmov 0   ;;  %v293_v2 = vld [vmem:[%s1184_s2] sm:$0xff]  ;;  %s267_s11 = scalar_select %p266_p11, %s918_s21, 1  ;;  %v296_v12 = vld [vmem:[%s1184_s2 + $0x18] sm:$0xff]  ;;  %vm361_vm0 = vcmask 130048  }
  0x17   : > { %786 = vset.pattern.permute.xlu1 %v928_v1  ;;  %785 = vset.pattern.permute.xlu0 %v928_v1  ;;  %v297_v3 = vld [vmem:[%s1184_s2 + $0x20] sm:$0xff]  ;;  %v710_v11 = vld [vmem:[%s1183_s1 + $0x10] sm:$0xff]  ;;  %v294_v13 = vld [vmem:[%s1184_s2 + $0x8] sm:$0xff] }
  0x18   : > { %313 = vperm.xlu0 %785, %v295_v0   ;;  %303 = vperm.xlu1 %786, %v293_v2   ;;  %s707_s14 = sshll.u32 %s267_s11, 5  ;;  %v708_v9 = vld [vmem:[%s1183_s1] sm:$0xff]  ;;  %v298_v14 = vld [vmem:[%s1184_s2 + $0x28] sm:$0xff]  ;;  %v299_v15 = vld [vmem:[%s1184_s2 + $0x30] sm:$0xff]  ;;  %s667_s11 = sshll.u32 %s1070_s10, 4 }
  0x19   : > { %787 = vset.pattern.permute.xlu2 %v928_v1  ;;  %s273_s17 = scalar_lea.vmem %s1182_s0, %s707_s14  ;;  %v300_v16 = vld [vmem:[%s1184_s2 + $0x38] sm:$0xff]  ;;  %v709_v17 = vld [vmem:[%s1183_s1 + $0x8] sm:$0xff]  ;;  %s250_s13 = scalar_lea.vmem [#allocation2], %s667_s11 }
  0x1a   : > { %323 = vperm.xlu2 %787, %v297_v3   ;;  %v279_v4 = vld [vmem:[%s273_s17] sm:$0xff]  ;;  %v281_v5 = vld [vmem:[%s273_s17 + $0x10] sm:$0xff]  ;;  %v280_v6 = vld [vmem:[%s273_s17 + $0x8] sm:$0xff]  ;;  %s669_s14 = sshll.u32 %s1070_s10, 5  ;;  %s473_s27 = sshll.u32 %s250_s13, 4  ;;  %s1082_s27 = int_to_ptr.vmem [resolvable:$true] %s473_s27 }
  0x1b   : > { %v283_v7 = vpack.c.bf16 %v281_v5, %v279_v4  ;;  %v282_v8 = vld [vmem:[%s273_s17 + $0x18] sm:$0xff]  ;;  %s472_s17 = scalar_lea.hbm %s1185_s3, %s1190_s12  ;;  %s1084_s7 = scalar_lea.vmem [#allocation6], %s669_s14 }
  0x1c   : > { %v284_v10 = vpack.c.bf16 %v282_v8, %v280_v6  ;;  %v711_v18 = vld [vmem:[%s1183_s1 + $0x18] sm:$0xff]  ;;  %s475_s29 = sshll.u32 %s472_s17, 4  ;;  %s808_s17 = scalar_lea.hbm %s1185_s3, 32  ;;  %s476_s29 = int_to_ptr.hbm [resolvable:$true] %s475_s29 }
  0x1d   : > { %381 = vmatpush.bf16.msra.mxu0 %v283_v7  ;;  %715 = vmatpush.bf16.msra.mxu2 %v283_v7  ;;  %s802_s9 = sshra.s32 %s476_s29, 4  ;;  %s803_s9 = int_to_ptr.hbm [resolvable:$true] %s802_s9 }
  0x1e   : > { %410 = vmatpush.bf16.msra.mxu1 %v284_v10  ;;  %716 = vmatpush.bf16.msra.mxu3 %v284_v10  ;;  %s804_s15 = scalar_lea.hbm %s803_s9, 16  ;;  %p809_p1 = scmp.lt.s32.totalorder %s803_s9, %s1185_s3 }
  0x1f   : > { %p805_p12 = scmp.ne.s32.totalorder %s803_s9, %s804_s15  ;;  %p810_p2 = scmp.lt.s32.totalorder %s808_s17, %s804_s15 }
  0x20   : > { %318 = vperm.xlu0 %785, %v296_v12   ;;  %308 = vperm.xlu1 %786, %v294_v13  }
  0x21   : > { %688 = vmatmul.msk.bf16.vlgmr.msra.gmra.mxu0 %vm361_vm0, %v708_v9  ;;  %690 = vmatmul.msk.bf16.vlgmr.msra.gmra.mxu2 %vm361_vm0, %v710_v11  ;;  %p806_p13 = pnand %p805_p12, %p1003_p4  ;;  %p811_p3 = por %p810_p2, %p809_p1 }
  0x22   : > { %692 = vmatmul.msk.bf16.vlgmr.msra.gmra.mxu1 %vm361_vm0, %v708_v9  ;;  %694 = vmatmul.msk.bf16.vlgmr.msra.gmra.mxu3 %vm361_vm0, %v710_v11 }
  0x23   : > { %328 = vperm.xlu2 %787, %v298_v14   ;;  %p807_p0 = pneg %p806_p13 }
  0x25   : > { %p812_p5 = pnand %p811_p3, %p807_p0 }
  0x28   : > { %333 = vperm.xlu0 %785, %v299_v15   ;;  %338 = vperm.xlu1 %786, %v300_v16  }
  0x31   : > { %689 = vmatmul.msk.bf16.gmra.mxu0 %vm361_vm0, %v709_v17  ;;  %691 = vmatmul.msk.bf16.gmra.mxu2 %vm361_vm0, %v711_v18 }
  0x32   : > { %693 = vmatmul.msk.bf16.gmra.mxu1 %vm361_vm0, %v709_v17  ;;  %695 = vmatmul.msk.bf16.gmra.mxu3 %vm361_vm0, %v711_v18 }
  0x74   : > { %v324_v25 = vpop.permute.xlu2 %323 }
  0x7d   : > { %v329_v39 = vpop.permute.xlu2 %328 }
  0x8a   : > { %v304_v19 = vpop.permute.xlu1 %303  ;;  %v314_v23 = vpop.permute.xlu0 %313 }
  0x92   : > { %v309_v30 = vpop.permute.xlu1 %308  ;;  %v319_v37 = vpop.permute.xlu0 %318 }
  0x9e   : > { %v383_v20 = vpop.f32.mrf.mxu0 }
  0x9f   : > { %v384_v21 = vadd.f32 %v383_v20, %v304_v19  ;;  %v412_v22 = vpop.f32.mrf.mxu1 }
  0xa0   : > { %v413_v24 = vadd.f32 %v412_v22, %v304_v19 }
  0xa2   : > { %v432_v26 = vpack.c.bf16 %v413_v24, %v384_v21 }
  0xa4   : > { %434 = vst [vmem:[%s250_s13] sm:$0xff] %v432_v26  ;;  %v393_v27 = vpop.f32.mrf.mxu2 }
  0xa5   : > { %v394_v28 = vadd.f32 %v393_v27, %v324_v25  ;;  %v422_v29 = vpop.f32.mrf.mxu3 }
  0xa6   : > { %v423_v31 = vadd.f32 %v422_v29, %v324_v25  ;;  %v385_v32 = vpop.f32.mrf.mxu0 }
  0xa7   : > { %v386_v33 = vadd.f32 %v385_v32, %v309_v30  ;;  %v414_v34 = vpop.f32.mrf.mxu1 }
  0xa8   : > { %v440_v35 = vpack.c.bf16 %v423_v31, %v394_v28  ;;  %v415_v36 = vadd.f32 %v414_v34, %v309_v30 }
  0xaa   : > { %444 = vst [vmem:[%s1084_s7] sm:$0xff] %v440_v35  ;;  %v433_v38 = vpack.c.bf16 %v415_v36, %v386_v33 }
  0xac   : > { %435 = vst [vmem:[%s250_s13 + $0x8] sm:$0xff] %v433_v38  ;;  %v395_v40 = vpop.f32.mrf.mxu2 }
  0xad   : > { %v396_v41 = vadd.f32 %v395_v40, %v329_v39  ;;  %v424_v42 = vpop.f32.mrf.mxu3 }
  0xae   : > { %815 = shalt.err (!%p812_p5)
}
  0xaf   : > { %s1191_s13 = smov 128   ;;  %s1193_s12 = smov 8   ;;  %v425_v43 = vadd.f32 %v424_v42, %v329_v39  ;;  %v388_v44 = vpop.f32.mrf.mxu0  ;;  %v417_v46 = vpop.f32.mrf.mxu1 }
  0xb0   : > { %717 = dma.vmem_to_hbm [thread:$0]  (%p1003_p4), %s1082_s27, 256, %s476_s29, %s449_s8, %s1191_s13, %s1191_s13, %s1193_s12   ;;  %v389_v45 = vadd.f32 %v388_v44, %v314_v23  ;;  %v418_v48 = vadd.f32 %v417_v46, %v314_v23  ;;  %v334_v50 = vpop.permute.xlu0 %333  ;;  %v339_v61 = vpop.permute.xlu1 %338 }
  0xb1   : > { %v441_v47 = vpack.c.bf16 %v425_v43, %v396_v41  ;;  %s257_s24 = scalar_lea.vmem [#allocation4], %s667_s11  ;;  %s1197_s25 = sshll.u32 %s918_s21, 4 }
  0xb2   : > { %v436_v49 = vpack.c.bf16 %v418_v48, %v389_v45  ;;  %s491_s27 = scalar_lea.hbm %s1186_s4, %s1197_s25  ;;  %s492_s29 = sshll.u32 %s257_s24, 4  ;;  %s1115_s29 = int_to_ptr.vmem [resolvable:$true] %s492_s29 }
  0xb3   : > { %445 = vst [vmem:[%s1084_s7 + $0x8] sm:$0xff] %v441_v47  ;;  %s714_s8 = sshll.u32 %s918_s21, 5  ;;  %s1198_s16 = sadd.s32 4294967295, %s926_s23  }
  0xb4   : > { %438 = vst [vmem:[%s257_s24] sm:$0xff] %v436_v49  ;;  %v398_v51 = vpop.f32.mrf.mxu2  ;;  %s1113_s10 = sand.u32 1, %s1198_s16   ;;  %s494_s11 = sshll.u32 %s491_s27, 4  ;;  %s495_s11 = int_to_ptr.hbm [resolvable:$true] %s494_s11 }
  0xb5   : > { %v399_v52 = vadd.f32 %v398_v51, %v334_v50  ;;  %v427_v53 = vpop.f32.mrf.mxu3  ;;  %s1120_s25 = scalar_lea.hbm %s1187_s5, %s714_s8  ;;  %s511_s21 = sshll.u32 %s1084_s7, 4  ;;  %s512_s21 = int_to_ptr.vmem [resolvable:$true] %s511_s21 }
  0xb6   : > { %v428_v54 = vadd.f32 %v427_v53, %v334_v50  ;;  %s513_s9 = sshll.u32 %s1120_s25, 4  ;;  %s454_s15 = scalar_lea.sflag [#allocation5], %s1113_s10  ;;  %s514_s9 = int_to_ptr.hbm [resolvable:$true] %s513_s9 }
  0xb7   : > { %v390_v55 = vpop.f32.mrf.mxu0  ;;  %v419_v57 = vpop.f32.mrf.mxu1  ;;  %s830_s27 = sshra.s32 %s495_s11, 4  ;;  %s836_s17 = scalar_lea.hbm %s1186_s4, 32  ;;  %s831_s27 = int_to_ptr.hbm [resolvable:$true] %s830_s27 }
  0xb8   : > { %v391_v56 = vadd.f32 %v390_v55, %v319_v37  ;;  %v442_v58 = vpack.c.bf16 %v428_v54, %v399_v52  ;;  %v420_v59 = vadd.f32 %v419_v57, %v319_v37  ;;  %s832_s16 = scalar_lea.hbm %s831_s27, 16  ;;  %p837_p10 = scmp.lt.s32.totalorder %s831_s27, %s1186_s4 }
  0xb9   : > { %p833_p6 = scmp.ne.s32.totalorder %s831_s27, %s832_s16  ;;  %p838_p11 = scmp.lt.s32.totalorder %s836_s17, %s832_s16 }
  0xba   : > { %446 = vst [vmem:[%s1084_s7 + $0x10] sm:$0xff] %v442_v58  ;;  %v437_v60 = vpack.c.bf16 %v420_v59, %v391_v56 }
  0xbb   : > { %p834_p7 = pnand %p833_p6, %p1003_p4  ;;  %p839_p12 = por %p838_p11, %p837_p10 }
  0xbc   : > { %439 = vst [vmem:[%s257_s24 + $0x8] sm:$0xff] %v437_v60  ;;  %v400_v62 = vpop.f32.mrf.mxu2 }
  0xbd   : > { %v401_v63 = vadd.f32 %v400_v62, %v339_v61  ;;  %v429_v0 = vpop.f32.mrf.mxu3  ;;  %p835_p9 = pneg %p834_p7 }
  0xbf   : > { %p840_p13 = pnand %p839_p12, %p835_p9 }
  0xc1   : > { %843 = shalt.err (!%p840_p13)
}
  0xc2   : > { %s1199_s24 = smov 8   ;;  %s1200_s25 = smov 128   ;;  %v430_v1 = vadd.f32 %v429_v0, %v339_v61 }
  0xc3   : > { %718 = dma.vmem_to_hbm [thread:$0]  (%p1003_p4), %s1115_s29, 256, %s495_s11, %s454_s15, %s1200_s25, %s1200_s25, %s1199_s24  }
  0xc4   : > { %v443_v2 = vpack.c.bf16 %v430_v1, %v401_v63  ;;  %s858_s12 = sshra.s32 %s514_s9, 4  ;;  %s864_s8 = scalar_lea.hbm %s1187_s5, 64  ;;  %s859_s12 = int_to_ptr.hbm [resolvable:$true] %s858_s12 }
  0xc5   : > { %s860_s13 = scalar_lea.hbm %s859_s12, 32  ;;  %p865_p3 = scmp.lt.s32.totalorder %s859_s12, %s1187_s5 }
  0xc6   : > { %447 = vst [vmem:[%s1084_s7 + $0x18] sm:$0xff] %v443_v2  ;;  %p861_p0 = scmp.ne.s32.totalorder %s859_s12, %s860_s13  ;;  %p866_p5 = scmp.lt.s32.totalorder %s864_s8, %s860_s13 }
  0xc8   : > { %p862_p1 = pnand %p861_p0, %p1003_p4  ;;  %p867_p6 = por %p866_p5, %p865_p3 }
  0xca   : > { %p863_p2 = pneg %p862_p1 }
  0xcc   : > { %p868_p7 = pnand %p867_p6, %p863_p2 }
  0xce   : > { %871 = shalt.err (!%p868_p7)
}
  0xcf   : > { %719 = dma.vmem_to_hbm [thread:$0]  (%p1003_p4), %s512_s21, 512, %s514_s9, %s454_s15, %s1200_s25, %s1200_s25, %s1199_s24  }
  0xd0 PF: > { %p733_p9 = scmp.ge.s32.totalorder %s926_s23, 2  ;;  %s528_s7 = sand.u32 1, %s906_s18  }
  0xd1   : > { %s529_s29 = scalar_lea.sflag [#allocation3], %s528_s7 }
  0xd2   : > { %p724_p10 = pnand %p733_p9, %p1012_p8 }
  0xd4   : > { %p725_p11 = pneg %p724_p10 }
  0xd6   : > { %897 = dma.done.wait (%p725_p11), %s529_s29, 256  }
  0xd7   : > { %899 = vsyncadd (%p725_p11), %s529_s29, 4294967040  ;;  %s1201_s28 = sadd.s32 4294967294, %s926_s23  }
  0xd8   : > { %s538_s11 = sand.u32 1, %s1201_s28  }
  0xd9   : > { %s539_s12 = scalar_lea.sflag [#allocation5], %s538_s11 }
  0xda   : > { %901 = dma.done.wait (%p725_p11), %s539_s12, 768  }
  0xdb   : > { %903 = vsyncadd (%p725_p11), %s539_s12, 4294966528  ;;  %s22_s23 = sadd.s32 1, %s926_s23   ;;  %s1202_s18 = smov %s910_s19 }
  0xdc   : > { %p19_p4 = scmp.ge.s32.totalorder %s22_s23, 4   ;;  %s1203_s19 = smov %s914_s20 }
  0xdd   : > { %s1204_s20 = smov %s1018_s6  ;;  %s1205_s21 = smov %s922_s22 }
  0xde   : > { %s1206_s22 = smov %s1208_s26  ;;  %21 = sbr.rel (!%p19_p4) target bundleno = 6 (0x6), region = 99 }
  0xe3   :  { %555 = vsyncpa [#allocation3], 1 }
  0xe4   :  { %557 = vsyncpa [#allocation3 + $0x1], 1 }
  0xe5   :  { %558 = vsyncpa [#allocation5], 1 }
  0xe6   :  { %560 = vsyncpa [#allocation5 + $0x1], 1 }

</bundles_post_ra>
